<compile_context>
chip_gen: v5e
topology: v5e:2x2
jax: 0.10.0
libtpu: 0.0.40
codegen_flags: <defaults>
</compile_context>

<pallas_src>
import math

import jax
import jax.numpy as jnp
from jax import lax
from jax.experimental import pallas as pl
from jax.experimental.pallas import tpu as pltpu

LANES = 128
SUBLANES = 8
ALIGN = SUBLANES * LANES          # 1024 elements = one (8, 128) f32 vreg tile
BLOCK_ROWS_CAP = 8192             # (8192, 128) f32 block = 4 MiB
# TODO(synk): optionally bump BLOCK_ROWS_CAP to 16384 on 128 MiB-VMEM chips
# (v5e/v6e) and sweep pl.Buffered(3) input pipelining on v7x.


def _chip_config():
    """(num_splits, block_rows_cap) for the current TPU generation."""
    kind = ""
    try:
        kind = jax.devices()[0].device_kind.lower()
    except Exception:
        pass
    two_tensorcores = "v7" in kind      # v7x has 2 TCs/chip; v5e/v6e have 1
    num_splits = 2 if two_tensorcores else 1
    return num_splits, BLOCK_ROWS_CAP


def _split_main_tail(flat):
    """flat (n,) -> ((rows, 128) main view or None, ragged tail or None).

    The main part is the largest 1024-multiple prefix; when n is already a
    multiple of 1024 the reshape is a free bitcast (no extra HBM pass).  The
    tail (< 1024 elements) is handled with a tiny XLA reduction by the caller.
    """
    n = flat.shape[0]
    n_main = (n // ALIGN) * ALIGN
    main = flat[:n_main].reshape(-1, LANES) if n_main > 0 else None
    tail = flat[n_main:] if n_main < n else None
    return main, tail


def _fold_rows(v):
    """(R, 128) -> (8, 128) by pairwise-tree summing 8-row vreg groups.

    Static 8-aligned slices + adds: pure VPU work (~1 add/vreg), free filler
    at mem-bound; no cross-lane XLU traffic and better accumulation accuracy.
    """
    chunks = [v[k * SUBLANES:(k + 1) * SUBLANES, :]
              for k in range(v.shape[0] // SUBLANES)]
    while len(chunks) > 1:
        nxt = [a + b for a, b in zip(chunks[0::2], chunks[1::2])]
        if len(chunks) % 2:
            nxt.append(chunks[-1])
        chunks = nxt
    return chunks[0]


def _partial_reduce(arrays, elementwise_fn):
    """sum(elementwise_fn(*arrays)) over identically shaped (rows, 128) views.

    Returns a (num_splits*8, 128) lane-dense array of partial sums; the caller
    finishes with a tiny jnp.sum in XLA.
    """
    rows = arrays[0].shape[0]                       # multiple of 8
    num_splits, block_cap = _chip_config()
    block_rows = min(block_cap, rows)               # multiple of 8
    blocks_total = pl.cdiv(rows, block_rows)
    if blocks_total < num_splits:
        num_splits = 1                              # nothing to split
    blocks_per_split = pl.cdiv(blocks_total, num_splits)

    has_partial = (rows % block_rows) != 0          # boundary block overhangs
    has_dup = (num_splits * blocks_per_split) != blocks_total
    num_full = blocks_total - 1 if has_partial else blocks_total
    last_rows = rows - (blocks_total - 1) * block_rows   # valid rows, boundary

    def in_map(c, i):
        # Clamp so duplicate / overhanging logical blocks stay in range; their
        # contribution is skipped / masked inside the kernel.
        return (jnp.minimum(c * blocks_per_split + i, blocks_total - 1), 0)

    def kernel(*refs):
        in_refs, out_ref = refs[:-1], refs[-1]

        @pl.when(pl.program_id(1) == 0)
        def _init():
            out_ref[...] = jnp.zeros_like(out_ref)

        vals = [r[...].astype(jnp.float32) for r in in_refs]
        v = elementwise_fn(*vals)
        folded = _fold_rows(v)

        if not (has_partial or has_dup):
            # Perfect tiling: every block takes the cheap unmasked path.
            out_ref[...] += folded
        else:
            b = pl.program_id(0) * blocks_per_split + pl.program_id(1)

            # Interior (fully valid) blocks: cheap unmasked accumulate.
            @pl.when(b < num_full)
            def _interior():
                out_ref[...] += folded

            if has_partial:
                # Single boundary block: mask by row index (cheap, no int32
                # flat-index overflow; select drops any garbage/-inf rows).
                @pl.when(b == blocks_total - 1)
                def _boundary():
                    rid = lax.broadcasted_iota(
                        jnp.int32, (block_rows, LANES), 0)
                    vm = jnp.where(rid < last_rows, v, 0.0)
                    out_ref[...] += _fold_rows(vm)
            # Duplicate clamped blocks (b >= blocks_total) contribute nothing.

    # Working set: inputs x 2 buffers x block + small output/scratch headroom.
    block_bytes = block_rows * LANES * 4
    vmem_limit = max(32 * 1024 * 1024,
                     len(arrays) * 2 * block_bytes + (8 << 20))

    return pl.pallas_call(
        kernel,
        out_shape=jax.ShapeDtypeStruct((num_splits * SUBLANES, LANES),
                                       jnp.float32),
        grid_spec=pltpu.PrefetchScalarGridSpec(
            num_scalar_prefetch=0,
            grid=(num_splits, blocks_per_split),
            in_specs=[pl.BlockSpec((block_rows, LANES), in_map)
                      for _ in arrays],
            out_specs=pl.BlockSpec((SUBLANES, LANES), lambda c, i: (c, 0)),
        ),
        compiler_params=pltpu.CompilerParams(
            dimension_semantics=("parallel", "arbitrary"),
            vmem_limit_bytes=vmem_limit,
        ),
    )(*arrays)


def _sum_sq_diff(x, y):
    """sum((x - y)**2) over all elements."""
    xm, xt = _split_main_tail(x.reshape(-1))
    ym, yt = _split_main_tail(y.reshape(-1))
    total = jnp.float32(0.0)
    if xm is not None:
        part = _partial_reduce([xm, ym], lambda a, b: (a - b) * (a - b))
        total = total + jnp.sum(part)
    if xt is not None:
        d = xt.astype(jnp.float32) - yt.astype(jnp.float32)
        total = total + jnp.sum(d * d)
    return total


def _sum_log(t):
    """sum(log(t)) over all elements of one likelihood tensor."""
    m, tail = _split_main_tail(t.reshape(-1))
    total = jnp.float32(0.0)
    if m is not None:
        total = total + jnp.sum(_partial_reduce([m], jnp.log))
    if tail is not None:
        total = total + jnp.sum(jnp.log(tail.astype(jnp.float32)))
    return total


def rate_distortion_loss(output, target, lmbda=0.01):
    """JAX/Pallas equivalent of RateDistortionLoss.forward."""
    N, C, H, W = target.shape
    num_pixels = N * H * W

    # bpp_loss = sum_k sum(log(likelihoods_k)) / (-log(2) * num_pixels)
    # One small launch per likelihood tensor (no concatenate -> no extra
    # HBM pass on this purely memory-bound path).
    log_sum = jnp.float32(0.0)
    for lik in output["likelihoods"].values():
        log_sum = log_sum + _sum_log(lik)
    bpp_loss = log_sum / (-math.log(2) * num_pixels)

    # mse_loss = mean((x_hat - target)^2)
    sq_sum = _sum_sq_diff(output["x_hat"], target)
    mse_loss = sq_sum / jnp.float32(target.size)

    loss = lmbda * (255.0 ** 2) * mse_loss + bpp_loss
    return {"bpp_loss": bpp_loss, "mse_loss": mse_loss, "loss": loss}


if __name__ == "__main__":
    key = jax.random.PRNGKey(0)
    k1, k2, k3, k4 = jax.random.split(key, 4)

    # Small NCHW shapes consistent with the forward pass.
    N, C, H, W = 2, 3, 16, 16
    target = jax.random.uniform(k1, (N, C, H, W), dtype=jnp.float32)
    x_hat = target + 0.05 * jax.random.normal(k2, (N, C, H, W),
                                              dtype=jnp.float32)

    # Two likelihood tensors ("y" and "z"), values strictly in (0, 1].
    lik_y = jax.random.uniform(k3, (N, 8, 8, 8), dtype=jnp.float32,
                               minval=1e-3, maxval=1.0)
    lik_z = jax.random.uniform(k4, (N, 4, 4, 4), dtype=jnp.float32,
                               minval=1e-3, maxval=1.0)

    output = {"x_hat": x_hat, "likelihoods": {"y": lik_y, "z": lik_z}}

    out = rate_distortion_loss(output, target, lmbda=0.01)
    out = jax.block_until_ready(out)

    # Pure-JAX reference check.
    num_pixels = N * H * W
    ref_bpp = (jnp.sum(jnp.log(lik_y)) + jnp.sum(jnp.log(lik_z))) / (
        -math.log(2) * num_pixels)
    ref_mse = jnp.mean((x_hat - target) ** 2)
    ref_loss = 0.01 * 255.0 ** 2 * ref_mse + ref_bpp

    assert jnp.allclose(out["bpp_loss"], ref_bpp, rtol=1e-3, atol=1e-3)
    assert jnp.allclose(out["mse_loss"], ref_mse, rtol=1e-3, atol=1e-6)
    assert jnp.allclose(out["loss"], ref_loss, rtol=1e-3, atol=1e-3)

    print("KERNEL_OK")
</pallas_src>

<mosaic_0001>
module attributes {stable_mosaic.version = 11 : i64} {
  func.func @kernel(%arg0: i32, %arg1: i32, %arg2: memref<8x128xf32, #tpu.memory_space<vmem>>, %arg3: memref<8x128xf32, #tpu.memory_space<vmem>>) attributes {dimension_semantics = [#tpu.dimension_semantics<parallel>, #tpu.dimension_semantics<arbitrary>], iteration_bounds = array<i64: 1, 1>, scalar_prefetch = 0 : i64, scratch_operands = 0 : i64, tpu.core_type = #tpu.core_type<tc>, window_params = [{transform_indices = @transform_0, window_bounds = array<i64: 8, 128>}, {transform_indices = @transform_1, window_bounds = array<i64: 8, 128>}]} {
    %c0_i32 = arith.constant 0 : i32
    %0 = arith.cmpi eq, %arg1, %c0_i32 : i32
    %1 = arith.extui %0 : i1 to i32
    %c0_i32_0 = arith.constant 0 : i32
    %2 = arith.cmpi ne, %1, %c0_i32_0 : i32
    scf.if %2 {
      %cst = arith.constant 0.000000e+00 : f32
      %8 = vector.broadcast %cst : f32 to vector<8x128xf32>
      %c0_6 = arith.constant 0 : index
      %c0_7 = arith.constant 0 : index
      %9 = vector.load %arg3[%c0_6, %c0_7] : memref<8x128xf32, #tpu.memory_space<vmem>>, vector<8x128xf32>
      tpu.vector_store %arg3[%c0_6, %c0_7], %8 {strides = array<i32>} : memref<8x128xf32, #tpu.memory_space<vmem>>, vector<8x128xf32>,
    } else {
    }
    %c0 = arith.constant 0 : index
    %c0_1 = arith.constant 0 : index
    %3 = vector.load %arg2[%c0, %c0_1] : memref<8x128xf32, #tpu.memory_space<vmem>>, vector<8x128xf32>
    %4 = math.log %3 : vector<8x128xf32>
    %c0_2 = arith.constant 0 : index
    %c0_3 = arith.constant 0 : index
    %5 = vector.load %arg3[%c0_2, %c0_3] : memref<8x128xf32, #tpu.memory_space<vmem>>, vector<8x128xf32>
    %6 = arith.addf %5, %4 : vector<8x128xf32>
    %c0_4 = arith.constant 0 : index
    %c0_5 = arith.constant 0 : index
    %7 = vector.load %arg3[%c0_4, %c0_5] : memref<8x128xf32, #tpu.memory_space<vmem>>, vector<8x128xf32>
    tpu.vector_store %arg3[%c0_4, %c0_5], %6 {strides = array<i32>} : memref<8x128xf32, #tpu.memory_space<vmem>>, vector<8x128xf32>,
    return
  }
  func.func @transform_0(%arg0: i32, %arg1: i32) -> (i32, i32) {
    %c1_i32 = arith.constant 1 : i32
    %0 = arith.muli %arg0, %c1_i32 : i32
    %1 = arith.addi %0, %arg1 : i32
    %c0_i32 = arith.constant 0 : i32
    %2 = arith.minsi %1, %c0_i32 : i32
    %c0_i32_0 = arith.constant 0 : i32
    %c0_i32_1 = arith.constant 0 : i32
    return %2, %c0_i32_0 : i32, i32
  }
  func.func @transform_1(%arg0: i32, %arg1: i32) -> (i32, i32) {
    %c0_i32 = arith.constant 0 : i32
    %c0_i32_0 = arith.constant 0 : i32
    return %arg0, %c0_i32 : i32, i32
  }
}

</mosaic_0001>

<bundles_post_ra>
// kernel: tpu_custom_call.1
= control target key start
LH: loop header
LB: loop body
LE: loop exit
PB: predicated region body
PF: predicated region fallthrough
CT: control target
= control target key end

     0   :  { %6 = vsyncpa [#allocation3], 0  ;;  %s136_s0 = inlined_call_operand.hbm [shape: f32[8,128], index: 0, kind: input, shape index: {}]   ;;  %s137_s1 = inlined_call_operand.hbm [shape: f32[8,128], index: 1, kind: output, shape index: {}]  }
   0x1   :  { %7 = vsyncpa [#allocation4], 0  ;;  %s18_s8 = sshll.u32 %s136_s0, 4  ;;  %s118_s9 = smov [#allocation2]   ;;  %s19_s8 = int_to_ptr.hbm [resolvable:$true] %s18_s8 }
   0x2   :  { %s20_s10 = sshll.u32 %s118_s9, 4  ;;  %s21_s10 = int_to_ptr.vmem [resolvable:$true] %s20_s10 }
   0x3   :  { %23 = dma.hbm_to_vmem [thread:$0]  %s19_s8, 128, %s21_s10, [#allocation3]  }
   0x4   :  { %114 = dma.done.wait [#allocation3], 128  }
   0x5   :  { %115 = vsyncadd [#allocation3], 4294967168  ;;  %v36_v0 = vld [vmem:[#allocation2] sm:$0xff]  ;;  %s119_s11 = smov [#allocation5]   ;;  %s49_s15 = sshll.u32 %s137_s1, 4  ;;  %s50_s15 = int_to_ptr.hbm [resolvable:$true] %s49_s15 }
   0x6   :  { %64 = vlog2.f32 %v36_v0  ;;  %s47_s12 = sshll.u32 %s119_s11, 4  ;;  %s48_s12 = int_to_ptr.vmem [resolvable:$true] %s47_s12 }
   0xc   :  { %v65_v1 = vpop.eup %64 }
   0xd   :  { %v38_v2 = vmul.f32 0.6931472, %v65_v1 }
   0xf   :  { %41 = vst [vmem:[#allocation5] sm:$0xff] %v38_v2 }
  0x10   :  { %52 = dma.vmem_to_hbm [thread:$0]  %s48_s12, 128, %s50_s15, [#allocation4]  }
  0x11   :  { %116 = dma.done.wait [#allocation4], 128  }
  0x12   :  { %117 = vsyncadd [#allocation4], 4294967168 }
  0x13   :  { %57 = vsyncpa [#allocation3], 1 }
  0x14   :  { %58 = vsyncpa [#allocation4], 1 }

</bundles_post_ra>
